<compile_context>
chip_gen: v5e
topology: v5e:2x2
jax: 0.10.0
libtpu: 0.0.40
codegen_flags: <defaults>
</compile_context>

<pallas_src>
import functools

import jax
import jax.numpy as jnp
from jax.experimental import pallas as pl
from jax.experimental.pallas import tpu as pltpu


def _round_up(x, m):
    return -(-x // m) * m


# -----------------------------------------------------------------------------
# Kernel 1: conv stem (3x3 s2 p1, folded BN, swish) + masked global average pool.
# grid = (B, L_pad // L_TILE); one image x one spatial tile per step.
#
#   tap_ref    : (1, K, L_TILE) bf16  K=16*Cin receptive-field rows, spatial on lanes
#   wT_ref     : (C, K)         bf16  transposed packed conv weight (BN scale folded)
#   bias_ref   : (C, 1)         f32   folded BN shift
#   pooled_ref : (1, C, 1)      f32   per-image pooled features (written on last l)
#   acc_ref    : (C, L_TILE)    f32   VMEM scratch for the masked partial sums
# -----------------------------------------------------------------------------
def _stem_pool_kernel(tap_ref, wT_ref, bias_ref, pooled_ref, acc_ref,
                      *, l_tile, l_valid, inv_hw):
    l = pl.program_id(1)

    @pl.when(l == 0)
    def _():
        acc_ref[...] = jnp.zeros_like(acc_ref)

    # Single K=48 MXU contraction: [C, K] @ [K, L_TILE] -> [C, L_TILE] (f32 acc).
    z = jnp.dot(wT_ref[...], tap_ref[0], preferred_element_type=jnp.float32)
    z = z + bias_ref[...]                       # folded BN shift  (f32, VPU)
    feat = z * jax.nn.sigmoid(z)                # swish            (f32, EUP)

    # In-kernel validity mask for the zero-padded spatial tail (no HBM pool vec).
    col = l * l_tile + jax.lax.broadcasted_iota(jnp.int32, feat.shape, 1)
    feat = jnp.where(col < l_valid, feat, 0.0)

    acc_ref[...] += feat

    @pl.when(l == pl.num_programs(1) - 1)
    def _():
        pooled_ref[0] = jnp.sum(acc_ref[...], axis=1, keepdims=True) * inv_hw


# -----------------------------------------------------------------------------
# Kernel 2: batched classifier head.
#   Linear(C -> C/2) + folded BatchNorm1d + ReLU + Dropout(eval=id) + Linear(C/2 -> ncls)
# Single invocation; all (tiny) operands whole-array resident in VMEM.
# -----------------------------------------------------------------------------
def _head_kernel(p_ref, w1_ref, b1_ref, w2_ref, b2_ref, o_ref):
    h = jnp.dot(p_ref[...], w1_ref[...], preferred_element_type=jnp.float32) + b1_ref[...]
    h = jnp.maximum(h, 0.0)
    o_ref[...] = jnp.dot(h, w2_ref[...], preferred_element_type=jnp.float32) + b2_ref[...]


# -----------------------------------------------------------------------------
# Wrapper: EnhancedMainNet.forward
# -----------------------------------------------------------------------------
def enhanced_mainnet_forward(x_nchw, params):
    """x_nchw: [B, Cin, H, W] float32 (PyTorch layout)."""
    B, Cin, H, W = x_nchw.shape
    assert H % 2 == 0 and W % 2 == 0
    Ho, Wo = H // 2, W // 2
    K = 16 * Cin
    L_valid = Ho * Wo

    wT, bias = params["stem_wT"], params["stem_bias"]
    w1, b1 = params["w1f"], params["b1f"]
    w2, b2 = params["w2"], params["b2"]
    C, C2, ncls = wT.shape[0], w1.shape[1], w2.shape[1]
    assert wT.shape[1] == K

    # Spatial tiling: flattened conv-output positions sit on lanes.
    L_TILE = min(512, _round_up(L_valid, 128))
    L_pad = _round_up(L_valid, L_TILE)
    n_l = L_pad // L_TILE
    assert L_pad >= L_valid

    # --- XLA glue: pack stride-2 3x3 receptive fields into a (B, K, L) tap tensor.
    # Row order is (dy, dx, r, s, c), matching the packed-weight row order.
    x = jnp.transpose(x_nchw, (0, 2, 3, 1))                       # NHWC
    xp = jnp.pad(x, ((0, 0), (1, 2), (1, 2), (0, 0)))             # pad 1 top/left, 2 bottom/right
    slabs = []
    for dy in (0, 1):
        for dx in (0, 1):
            for r in (0, 1):
                for s in (0, 1):
                    ky, kx = 2 * dy + r, 2 * dx + s
                    slabs.append(xp[:, ky:ky + 2 * Ho:2, kx:kx + 2 * Wo:2, :])
    taps = jnp.stack(slabs, axis=1)                               # [B, 16, Ho, Wo, Cin]
    taps = jnp.transpose(taps, (0, 1, 4, 2, 3)).reshape(B, K, L_valid)
    taps = jnp.pad(taps, ((0, 0), (0, 0), (0, L_pad - L_valid))).astype(jnp.bfloat16)

    kernel = functools.partial(_stem_pool_kernel, l_tile=L_TILE,
                               l_valid=L_valid, inv_hw=1.0 / L_valid)

    pooled = pl.pallas_call(
        kernel,
        out_shape=jax.ShapeDtypeStruct((B, C, 1), jnp.float32),
        grid=(B, n_l),
        in_specs=[
            pl.BlockSpec((1, K, L_TILE), lambda b, l: (b, 0, l)),
            pl.BlockSpec((C, K), lambda b, l: (0, 0)),
            pl.BlockSpec((C, 1), lambda b, l: (0, 0)),
        ],
        out_specs=pl.BlockSpec((1, C, 1), lambda b, l: (b, 0, 0)),
        scratch_shapes=[pltpu.VMEM((C, L_TILE), jnp.float32)],
        compiler_params=pltpu.CompilerParams(
            dimension_semantics=("parallel", "arbitrary")),
    )(taps, wT, bias)

    pooled_bc = pooled.reshape(B, C)          # dropout is identity in eval

    logits = pl.pallas_call(
        _head_kernel,
        out_shape=jax.ShapeDtypeStruct((B, ncls), jnp.float32),
    )(pooled_bc, w1, b1, w2, b2)
    return logits


# -----------------------------------------------------------------------------
# Deterministic parameter construction (synthetic, not a checkpoint load).
# Builds a genuine 3x3 HWIO conv weight + BN params, then folds / re-packs them
# into the K=48 transposed layout the kernel consumes.
# -----------------------------------------------------------------------------
def make_params(key, *, cin=3, c_feat=32, num_classes=2):
    k = jax.random.split(key, 8)
    chalf = c_feat // 2

    w_conv = 0.1 * jax.random.normal(k[0], (3, 3, cin, c_feat), jnp.float32)   # HWIO
    bn_scale = 1.0 + 0.05 * jax.random.normal(k[1], (c_feat,), jnp.float32)    # gamma/sqrt(var+eps)
    bn_shift = 0.05 * jax.random.normal(k[2], (c_feat,), jnp.float32)          # beta - mean*scale
    w1 = 0.1 * jax.random.normal(k[3], (c_feat, chalf), jnp.float32)
    b1 = 0.05 * jax.random.normal(k[4], (chalf,), jnp.float32)
    g = 1.0 + 0.05 * jax.random.normal(k[5], (chalf,), jnp.float32)            # folded BN1d scale
    be = 0.05 * jax.random.normal(k[6], (chalf,), jnp.float32)                 # folded BN1d shift
    w2 = 0.1 * jax.random.normal(k[7], (chalf, num_classes), jnp.float32)
    b2 = jnp.zeros((num_classes,), jnp.float32)

    # Re-pack 3x3 conv weight into (dy,dx,r,s,c)-ordered K=16*cin rows (rows with
    # ky==3 or kx==3 are zero), fold BN scale in, transpose to [C, K].
    pack = 4 * cin
    blocks = []
    for dy in (0, 1):
        for dx in (0, 1):
            tap = jnp.zeros((2, 2, cin, c_feat), jnp.float32)
            for r in (0, 1):
                for s in (0, 1):
                    ky, kx = 2 * dy + r, 2 * dx + s
                    if ky <= 2 and kx <= 2:
                        tap = tap.at[r, s].set(w_conv[ky, kx])
            blocks.append(tap.reshape(pack, c_feat))
    w_packed = jnp.concatenate(blocks, axis=0) * bn_scale[None, :]             # [K, C]

    # Fold BatchNorm1d (eval) into the first head Linear.
    w1f = w1 * g[None, :]
    b1f = b1 * g + be

    return {
        "stem_wT": jnp.transpose(w_packed).astype(jnp.bfloat16),               # [C, K]
        "stem_bias": bn_shift.reshape(c_feat, 1),
        "w1f": w1f,
        "b1f": b1f.reshape(1, chalf),
        "w2": w2,
        "b2": b2.reshape(1, num_classes),
        # raw pieces for the pure-JAX reference check
        "ref": {"w_conv": w_conv, "bn_scale": bn_scale, "bn_shift": bn_shift,
                "w1f": w1f, "b1f": b1f, "w2": w2, "b2": b2},
    }


def reference_forward(x_nchw, ref):
    """Plain-JAX reference of the same forward (f32 everywhere)."""
    x = jnp.transpose(x_nchw, (0, 2, 3, 1))
    z = jax.lax.conv_general_dilated(
        x, ref["w_conv"], window_strides=(2, 2), padding=((1, 1), (1, 1)),
        dimension_numbers=("NHWC", "HWIO", "NHWC"))
    z = z * ref["bn_scale"] + ref["bn_shift"]
    f = z * jax.nn.sigmoid(z)
    p = jnp.mean(f, axis=(1, 2))
    h = jnp.maximum(p @ ref["w1f"] + ref["b1f"], 0.0)
    return h @ ref["w2"] + ref["b2"]


if __name__ == "__main__":
    key = jax.random.PRNGKey(0)
    kx, kp = jax.random.split(key)

    # Small synthetic input consistent with the module's 3-channel image input.
    x = jax.random.normal(kx, (2, 3, 16, 16), jnp.float32)      # NCHW like PyTorch
    params = make_params(kp, cin=3, c_feat=32, num_classes=2)

    fwd = jax.jit(functools.partial(enhanced_mainnet_forward, params=params))
    out = fwd(x)
    jax.block_until_ready(out)

    assert out.shape == (2, 2) and out.dtype == jnp.float32
    assert bool(jnp.all(jnp.isfinite(out)))
    ref = reference_forward(x, params["ref"])
    assert bool(jnp.allclose(out, ref, atol=1e-2, rtol=2e-2)), (out, ref)
    print("KERNEL_OK")
</pallas_src>

<mosaic_0001>
module attributes {stable_mosaic.version = 11 : i64} {
  func.func @_stem_pool_kernel(%arg0: i32, %arg1: i32, %arg2: memref<1x48x128xbf16, #tpu.memory_space<vmem>>, %arg3: memref<32x48xbf16, #tpu.memory_space<vmem>>, %arg4: memref<32x1xf32, #tpu.memory_space<vmem>>, %arg5: memref<1x32x1xf32, #tpu.memory_space<vmem>>, %arg6: memref<32x128xf32, #tpu.memory_space<vmem>>) attributes {dimension_semantics = [#tpu.dimension_semantics<parallel>, #tpu.dimension_semantics<arbitrary>], iteration_bounds = array<i64: 2, 1>, scalar_prefetch = 0 : i64, scratch_operands = 1 : i64, tpu.core_type = #tpu.core_type<tc>, window_params = [{transform_indices = @transform_0, window_bounds = array<i64: 1, 48, 128>}, {pipeline_mode = #tpu.pipeline_mode<synchronous>, transform_indices = @transform_1, window_bounds = array<i64: 32, 48>}, {pipeline_mode = #tpu.pipeline_mode<synchronous>, transform_indices = @transform_2, window_bounds = array<i64: 32, 1>}, {transform_indices = @transform_3, window_bounds = array<i64: 1, 32, 1>}]} {
    %c0_i32 = arith.constant 0 : i32
    %0 = arith.cmpi eq, %arg1, %c0_i32 : i32
    %1 = arith.extui %0 : i1 to i32
    %c0_i32_0 = arith.constant 0 : i32
    %2 = arith.cmpi ne, %1, %c0_i32_0 : i32
    scf.if %2 {
      %cst_15 = arith.constant 0.000000e+00 : f32
      %30 = vector.broadcast %cst_15 : f32 to vector<32x128xf32>
      %c0_16 = arith.constant 0 : index
      %c0_17 = arith.constant 0 : index
      %31 = vector.load %arg6[%c0_16, %c0_17] : memref<32x128xf32, #tpu.memory_space<vmem>>, vector<32x128xf32>
      tpu.vector_store %arg6[%c0_16, %c0_17], %30 {strides = array<i32>} : memref<32x128xf32, #tpu.memory_space<vmem>>, vector<32x128xf32>,
    } else {
    }
    %c0 = arith.constant 0 : index
    %c0_1 = arith.constant 0 : index
    %3 = vector.load %arg3[%c0, %c0_1] : memref<32x48xbf16, #tpu.memory_space<vmem>>, vector<32x48xbf16>
    %c0_2 = arith.constant 0 : index
    %c0_3 = arith.constant 0 : index
    %c0_4 = arith.constant 0 : index
    %4 = vector.load %arg2[%c0_2, %c0_3, %c0_4] : memref<1x48x128xbf16, #tpu.memory_space<vmem>>, vector<1x48x128xbf16>
    %5 = vector.shape_cast %4 : vector<1x48x128xbf16> to vector<48x128xbf16>
    %cst = arith.constant dense<0.000000e+00> : vector<32x128xf32>
    %6 = tpu.matmul %3, %5, %cst {dimension_numbers = #tpu.dot_dimension_numbers<[1], [0], [0], [1], [0, 0, 1, 1], [], []>} : vector<32x48xbf16>, vector<48x128xbf16>, vector<32x128xf32> -> vector<32x128xf32>
    %c0_5 = arith.constant 0 : index
    %c0_6 = arith.constant 0 : index
    %7 = vector.load %arg4[%c0_5, %c0_6] : memref<32x1xf32, #tpu.memory_space<vmem>>, vector<32x1xf32>
    %8 = vector.broadcast %7 : vector<32x1xf32> to vector<32x128xf32>
    %9 = arith.addf %6, %8 : vector<32x128xf32>
    %10 = arith.negf %9 : vector<32x128xf32>
    %11 = math.exp %10 : vector<32x128xf32>
    %cst_7 = arith.constant 1.000000e+00 : f32
    %12 = vector.broadcast %cst_7 : f32 to vector<32x128xf32>
    %13 = arith.addf %12, %11 : vector<32x128xf32>
    %14 = arith.divf %12, %13 : vector<32x128xf32>
    %15 = arith.mulf %9, %14 : vector<32x128xf32>
    %c128_i32 = arith.constant 128 : i32
    %16 = arith.muli %arg1, %c128_i32 : i32
    %17 = tpu.iota {dimensions = array<i32: 1>} : vector<32x128xi32>
    %18 = vector.broadcast %16 : i32 to vector<32x128xi32>
    %19 = arith.addi %18, %17 : vector<32x128xi32>
    %c64_i32 = arith.constant 64 : i32
    %20 = vector.broadcast %c64_i32 : i32 to vector<32x128xi32>
    %21 = arith.cmpi slt, %19, %20 : vector<32x128xi32>
    %cst_8 = arith.constant 0.000000e+00 : f32
    %22 = vector.broadcast %cst_8 : f32 to vector<32x128xf32>
    %23 = arith.select %21, %15, %22 : vector<32x128xi1>, vector<32x128xf32>
    %c0_9 = arith.constant 0 : index
    %c0_10 = arith.constant 0 : index
    %24 = vector.load %arg6[%c0_9, %c0_10] : memref<32x128xf32, #tpu.memory_space<vmem>>, vector<32x128xf32>
    %25 = arith.addf %24, %23 : vector<32x128xf32>
    %c0_11 = arith.constant 0 : index
    %c0_12 = arith.constant 0 : index
    %26 = vector.load %arg6[%c0_11, %c0_12] : memref<32x128xf32, #tpu.memory_space<vmem>>, vector<32x128xf32>
    tpu.vector_store %arg6[%c0_11, %c0_12], %25 {strides = array<i32>} : memref<32x128xf32, #tpu.memory_space<vmem>>, vector<32x128xf32>,
    %c0_i32_13 = arith.constant 0 : i32
    %27 = arith.cmpi eq, %arg1, %c0_i32_13 : i32
    %28 = arith.extui %27 : i1 to i32
    %c0_i32_14 = arith.constant 0 : i32
    %29 = arith.cmpi ne, %28, %c0_i32_14 : i32
    scf.if %29 {
      %c0_15 = arith.constant 0 : index
      %c0_16 = arith.constant 0 : index
      %30 = vector.load %arg6[%c0_15, %c0_16] : memref<32x128xf32, #tpu.memory_space<vmem>>, vector<32x128xf32>
      %cst_17 = arith.constant dense<0.000000e+00> : vector<32xf32>
      %31 = vector.multi_reduction <add>, %30, %cst_17 [1] : vector<32x128xf32> to vector<32xf32>
      %32 = vector.shape_cast %31 : vector<32xf32> to vector<32x1xf32>
      %cst_18 = arith.constant 1.562500e-02 : f32
      %33 = vector.broadcast %cst_18 : f32 to vector<32x1xf32>
      %34 = arith.mulf %32, %33 : vector<32x1xf32>
      %c0_19 = arith.constant 0 : index
      %c0_20 = arith.constant 0 : index
      %c0_21 = arith.constant 0 : index
      %35 = vector.load %arg5[%c0_19, %c0_20, %c0_21] : memref<1x32x1xf32, #tpu.memory_space<vmem>>, vector<1x32x1xf32>
      %36 = vector.shape_cast %35 : vector<1x32x1xf32> to vector<32x1xf32>
      %37 = vector.shape_cast %34 : vector<32x1xf32> to vector<1x32x1xf32>
      tpu.vector_store %arg5[%c0_19, %c0_20, %c0_21], %37 {strides = array<i32>} : memref<1x32x1xf32, #tpu.memory_space<vmem>>, vector<1x32x1xf32>,
    } else {
    }
    return
  }
  func.func @transform_0(%arg0: i32, %arg1: i32) -> (i32, i32, i32) {
    %c0_i32 = arith.constant 0 : i32
    %c0_i32_0 = arith.constant 0 : i32
    return %arg0, %c0_i32, %arg1 : i32, i32, i32
  }
  func.func @transform_1(%arg0: i32, %arg1: i32) -> (i32, i32) {
    %c0_i32 = arith.constant 0 : i32
    %c0_i32_0 = arith.constant 0 : i32
    %c0_i32_1 = arith.constant 0 : i32
    return %c0_i32, %c0_i32_0 : i32, i32
  }
  func.func @transform_2(%arg0: i32, %arg1: i32) -> (i32, i32) {
    %c0_i32 = arith.constant 0 : i32
    %c0_i32_0 = arith.constant 0 : i32
    %c0_i32_1 = arith.constant 0 : i32
    return %c0_i32, %c0_i32_0 : i32, i32
  }
  func.func @transform_3(%arg0: i32, %arg1: i32) -> (i32, i32, i32) {
    %c0_i32 = arith.constant 0 : i32
    %c0_i32_0 = arith.constant 0 : i32
    %c0_i32_1 = arith.constant 0 : i32
    return %arg0, %c0_i32, %c0_i32_0 : i32, i32, i32
  }
}

module attributes {stable_mosaic.version = 11 : i64} {
  func.func @_head_kernel(%arg0: memref<2x32xf32, #tpu.memory_space<vmem>>, %arg1: memref<32x16xf32, #tpu.memory_space<vmem>>, %arg2: memref<1x16xf32, #tpu.memory_space<vmem>>, %arg3: memref<16x2xf32, #tpu.memory_space<vmem>>, %arg4: memref<1x2xf32, #tpu.memory_space<vmem>>, %arg5: memref<2x2xf32, #tpu.memory_space<vmem>>) attributes {dimension_semantics = [], scalar_prefetch = 0 : i64, scratch_operands = 0 : i64, tpu.core_type = #tpu.core_type<tc>} {
    %c0 = arith.constant 0 : index
    %c0_0 = arith.constant 0 : index
    %0 = vector.load %arg0[%c0, %c0_0] : memref<2x32xf32, #tpu.memory_space<vmem>>, vector<2x32xf32>
    %c0_1 = arith.constant 0 : index
    %c0_2 = arith.constant 0 : index
    %1 = vector.load %arg1[%c0_1, %c0_2] : memref<32x16xf32, #tpu.memory_space<vmem>>, vector<32x16xf32>
    %cst = arith.constant dense<0.000000e+00> : vector<2x16xf32>
    %2 = tpu.matmul %0, %1, %cst {dimension_numbers = #tpu.dot_dimension_numbers<[1], [0], [0], [1], [0, 0, 1, 1], [], []>} : vector<2x32xf32>, vector<32x16xf32>, vector<2x16xf32> -> vector<2x16xf32>
    %c0_3 = arith.constant 0 : index
    %c0_4 = arith.constant 0 : index
    %3 = vector.load %arg2[%c0_3, %c0_4] : memref<1x16xf32, #tpu.memory_space<vmem>>, vector<1x16xf32>
    %4 = vector.broadcast %3 : vector<1x16xf32> to vector<2x16xf32>
    %5 = arith.addf %2, %4 : vector<2x16xf32>
    %cst_5 = arith.constant 0.000000e+00 : f32
    %6 = vector.broadcast %cst_5 : f32 to vector<2x16xf32>
    %7 = arith.maximumf %5, %6 : vector<2x16xf32>
    %c0_6 = arith.constant 0 : index
    %c0_7 = arith.constant 0 : index
    %8 = vector.load %arg3[%c0_6, %c0_7] : memref<16x2xf32, #tpu.memory_space<vmem>>, vector<16x2xf32>
    %cst_8 = arith.constant dense<0.000000e+00> : vector<2x2xf32>
    %9 = tpu.matmul %7, %8, %cst_8 {dimension_numbers = #tpu.dot_dimension_numbers<[1], [0], [0], [1], [0, 0, 1, 1], [], []>} : vector<2x16xf32>, vector<16x2xf32>, vector<2x2xf32> -> vector<2x2xf32>
    %c0_9 = arith.constant 0 : index
    %c0_10 = arith.constant 0 : index
    %10 = vector.load %arg4[%c0_9, %c0_10] : memref<1x2xf32, #tpu.memory_space<vmem>>, vector<1x2xf32>
    %11 = vector.broadcast %10 : vector<1x2xf32> to vector<2x2xf32>
    %12 = arith.addf %9, %11 : vector<2x2xf32>
    %c0_11 = arith.constant 0 : index
    %c0_12 = arith.constant 0 : index
    %13 = vector.load %arg5[%c0_11, %c0_12] : memref<2x2xf32, #tpu.memory_space<vmem>>, vector<2x2xf32>
    tpu.vector_store %arg5[%c0_11, %c0_12], %12 {strides = array<i32>} : memref<2x2xf32, #tpu.memory_space<vmem>>, vector<2x2xf32>,
    return
  }
}

</mosaic_0001>

<bundles_post_ra>
// kernel: enhanced_mainnet_forward.3
= control target key start
LH: loop header
LB: loop body
LE: loop exit
PB: predicated region body
PF: predicated region fallthrough
CT: control target
= control target key end

     0   :  { %s195_s0 = inlined_call_operand.vmem [shape: f32[2,32], index: 0, kind: input, shape index: {}]   ;;  %s196_s1 = inlined_call_operand.vmem [shape: f32[32,16], index: 1, kind: input, shape index: {}]   ;;  %s197_s2 = inlined_call_operand.vmem [shape: f32[1,16], index: 2, kind: input, shape index: {}]   ;;  %s198_s3 = inlined_call_operand.vmem [shape: f32[16,2], index: 3, kind: input, shape index: {}]   ;;  %s199_s4 = inlined_call_operand.vmem [shape: f32[1,2], index: 4, kind: input, shape index: {}]   ;;  %s200_s5 = inlined_call_operand.hbm [shape: f32[2,2], index: 5, kind: output, shape index: {}]  }
   0x1   :  { %v25_v0 = vld [vmem:[%s196_s1 + $0x18] sm:$0xff]  ;;  %v24_v1 = vld [vmem:[%s196_s1 + $0x10] sm:$0xff]  ;;  %v23_v2 = vld [vmem:[%s196_s1 + $0x8] sm:$0xff] }
   0x2   :  { %46 = vmatpush.msra.mxu0 %v25_v0 }
   0x3   :  { %10 = vsyncpa [#allocation3], 0  ;;  %v22_v3 = vld [vmem:[%s196_s1] sm:$0xff]  ;;  %vm30_vm0 = vcmask 261120   ;;  %v56_v5 = vld [vmem:[%s198_s3 + $0x8] sm:$0xff]  ;;  %vm61_vm1 = vcmask 130048  }
   0x4   :  { %47 = vmatpush.msra.mxu0 %v24_v1  ;;  %v21_v4 = vld [vmem:[%s195_s0] sm:$0x3]  ;;  %79 = vmatpush.msra.mxu1 %v56_v5  ;;  %s134_s9 = smov [#allocation2]   ;;  %vm85_vm2 = vcmask 9216  }
   0x5   :  { %v55_v6 = vld [vmem:[%s198_s3] sm:$0xff]  ;;  %s92_s10 = sshll.u32 %s134_s9, 4  ;;  %s94_s3 = sshll.u32 %s200_s5, 4  ;;  %s93_s10 = int_to_ptr.vmem [resolvable:$true] %s92_s10  ;;  %s95_s3 = int_to_ptr.hbm [resolvable:$true] %s94_s3 }
   0x6   :  { %48 = vmatpush.msra.mxu0 %v23_v2  ;;  %80 = vmatpush.msra.mxu1 %v55_v6  ;;  %v106_v7 = vld [vmem:[%s197_s2] ss:$0 sm:$0xff] }
   0x7   :  { %v107_v11 = vld [vmem:[%s199_s4] ss:$0 sm:$0xff] }
   0x8   :  { %49 = vmatpush.msra.mxu0 %v22_v3 }
   0x9   :  { %103 = vmatmul.msk.f32.vlgmr.msra.gmra.mxu0 %vm30_vm0, %v21_v4 }
  0x86   :  { %v51_v8 = vpop.f32.mrf.mxu0 }
  0x87   :  { %v52_v9 = vadd.f32 %v106_v7, %v51_v8 }
  0x89   :  { %v54_v10 = vmax.f32 %v52_v9, 0.0 }
  0x8b   :  { %104 = vmatmul.msk.f32.vlgmr.msra.gmra.mxu1 %vm61_vm1, %v54_v10 }
 0x108   :  { %v82_v12 = vpop.f32.mrf.mxu1 }
 0x109   :  { %v83_v13 = vadd.f32 %v107_v11, %v82_v12 }
 0x10b   :  { %86 = vst.msk [vmem:[#allocation2] sm:$0x3] %vm85_vm2, %v83_v13 }
 0x10c   :  { %97 = dma.vmem_to_hbm [thread:$0]  %s93_s10, 32, %s95_s3, [#allocation3]  }
 0x10d   :  { %132 = dma.done.wait [#allocation3], 32  }
 0x10e   :  { %133 = vsyncadd [#allocation3], 4294967264 }
 0x10f   :  { %102 = vsyncpa [#allocation3], 1 }

// kernel: enhanced_mainnet_forward.2
= control target key start
LH: loop header
LB: loop body
LE: loop exit
PB: predicated region body
PF: predicated region fallthrough
CT: control target
= control target key end

     0   :  { %s620_s12 = smov 0   ;;  %s622_s13 = smov 0   ;;  %s695_s0 = inlined_call_operand.vmem [shape: bf16[2,48,128], index: 0, kind: input, shape index: {}]   ;;  %s696_s1 = inlined_call_operand.vmem [shape: bf16[32,48], index: 1, kind: input, shape index: {}]   ;;  %s697_s2 = inlined_call_operand.vmem [shape: f32[32,1], index: 2, kind: input, shape index: {}]   ;;  %s698_s3 = inlined_call_operand.vmem [shape: f32[2,32,1], index: 3, kind: output, shape index: {}]  }
   0x1   :  { %s624_s14 = smov 0  }
   0x2 LB: > { %s25_s15 = sadd.s32 1, %s593_s13  ;;  %p490_p0 = scmp.ge.s32.totalorder %s597_s14, 1  ;;  %s597_s14 = sphi %s624_s14, %s13_s14   ;;  %s593_s13 = sphi %s622_s13, %s700_s13   ;;  %s589_s12 = sphi %s620_s12, %s699_s12  }
   0x3   : > { %p27_p1 = scmp.ge.s32.totalorder %s25_s15, 2  ;;  %p154_p2 = scmp.lt.s32.totalorder %s597_s14, 3 }
   0x5   : > { %s702_s15 = smov (%p27_p1, %s25_s15), 0  ;;  %p155_p3 = pnand %p490_p0, %p154_p2 }
   0x6   : > { %p181_p4 = scmp.lt.s32.totalorder (!%p155_p3), %s589_s12, 1 }
   0x7   : > { %158 = sbr.rel (%p155_p3) target bundleno = 317 (0x13d), region = 32 }
   0xc   : > { %v215_v0 = vld [vmem:[%s697_s2 + $0x10] sm:$0xff]  ;;  %v599_v1 = vmov 0   ;;  %v213_v2 = vld [vmem:[%s697_s2] sm:$0xff]  ;;  %s704_s12 = smov (!%p181_p4, %s589_s12), 1  ;;  %v216_v4 = vld [vmem:[%s697_s2 + $0x18] sm:$0xff]  ;;  %vm265_vm0 = vcmask 392192   ;;  %v372_v37 = vlaneseq }
   0xd   : > { %558 = vset.pattern.permute.xlu1 %v599_v1  ;;  %557 = vset.pattern.permute.xlu0 %v599_v1  ;;  %s531_s20 = smul.u32 24, %s704_s12  ;;  %v214_v5 = vld [vmem:[%s697_s2 + $0x8] sm:$0xff]  ;;  %v523_v8 = vld [vmem:[%s696_s1] sm:$0xff]  ;;  %s522_s5 = sshll.u32 %s704_s12, 5 }
   0xe   : > { %229 = vperm.xlu1 %558, %v215_v0   ;;  %219 = vperm.xlu0 %557, %v213_v2   ;;  %v524_v9 = vld [vmem:[%s696_s1 + $0x8] sm:$0xff]  ;;  %v373_v47 = vand.u32 127, %v372_v37  ;;  %s193_s8 = scalar_lea.vmem %s698_s3, %s522_s5 }
   0xf   : > { %s188_s23 = scalar_lea.vmem %s695_s0, %s531_s20 }
  0x10   : > { %v527_v3 = vld [vmem:[%s188_s23 + $0x10] sm:$0xff]  ;;  %v526_v6 = vld [vmem:[%s188_s23 + $0x8] sm:$0xff]  ;;  %v525_v7 = vld [vmem:[%s188_s23] sm:$0xff]  ;;  %vm376_vm9 = vcmp.lt.s32.totalorder %v373_v47, 64 }
  0x11   : > { %277 = vmatpush.bf16.msra.mxu0 %v527_v3  ;;  %528 = vmatpush.bf16.msra.mxu1 %v527_v3 }
  0x15   : > { %278 = vmatpush.bf16.msra.mxu0 %v526_v6  ;;  %529 = vmatpush.bf16.msra.mxu1 %v526_v6 }
  0x16   : > { %234 = vperm.xlu1 %558, %v216_v4   ;;  %224 = vperm.xlu0 %557, %v214_v5  }
  0x19   : > { %279 = vmatpush.bf16.msra.mxu0 %v525_v7  ;;  %530 = vmatpush.bf16.msra.mxu1 %v525_v7 }
  0x1c   : > { %514 = vmatmul.msk.bf16.vlgmr.msra.gmra.mxu0 %vm265_vm0, %v523_v8  ;;  %515 = vmatmul.msk.bf16.vlgmr.msra.gmra.mxu1 %vm265_vm0, %v524_v9 }
  0x80   : > { %v230_v10 = vpop.permute.xlu1 %229  ;;  %v220_v11 = vpop.permute.xlu0 %219 }
  0x88   : > { %v235_v18 = vpop.permute.xlu1 %234  ;;  %v225_v19 = vpop.permute.xlu0 %224 }
  0x99   : > { %v281_v12 = vpop.f32.mrf.mxu0  ;;  %v286_v13 = vpop.f32.mrf.mxu1 }
  0x9a   : > { %v662_v14 = vadd.f32 %v281_v12, %v220_v11  ;;  %v664_v15 = vadd.f32 %v286_v13, %v230_v10 }
  0x9c   : > { %v516_v16 = vmul.f32 -1.442695, %v662_v14  ;;  %v518_v17 = vmul.f32 -1.442695, %v664_v15 }
  0x9e   : > { %559 = vpow2.f32 %v516_v16 }
  0x9f   : > { %561 = vpow2.f32 %v518_v17 }
  0xa1   : > { %v283_v20 = vpop.f32.mrf.mxu0  ;;  %v288_v21 = vpop.f32.mrf.mxu1 }
  0xa2   : > { %v668_v22 = vadd.f32 %v283_v20, %v225_v19  ;;  %v670_v23 = vadd.f32 %v288_v21, %v235_v18 }
  0xa4   : > { %v560_v24 = vpop.eup %559  ;;  %v517_v25 = vmul.f32 -1.442695, %v668_v22  ;;  %v519_v28 = vmul.f32 -1.442695, %v670_v23 }
  0xa5   : > { %v562_v26 = vpop.eup %561  ;;  %v303_v27 = vadd.f32 1.0, %v560_v24 }
  0xa6   : > { %v305_v29 = vadd.f32 1.0, %v562_v26  ;;  %563 = vpow2.f32 %v517_v25 }
  0xa7   : > { %565 = vrcp.f32 %v303_v27  ;;  %v316_v41 = vand.u32 2147483647, %v303_v27  ;;  %v318_v42 = vand.u32 2147483648, %v303_v27  ;;  %vm312_vm3 = vweird.f32 %v303_v27 }
  0xa8   : > { %567 = vrcp.f32 %v305_v29  ;;  %v348_v43 = vand.u32 2147483648, %v305_v29  ;;  %v346_v46 = vand.u32 2147483647, %v305_v29  ;;  %vm342_vm4 = vweird.f32 %v305_v29 }
  0xa9   : > { %569 = vpow2.f32 %v519_v28  ;;  %v319_v51 = vor.u32 1.1754944e-38, %v318_v42  ;;  %vm317_vm7 = vcmp.eq.f32.partialorder %v316_v41, 8.507059e+37 }
  0xaa   : > { %v349_v52 = vor.u32 1.1754944e-38, %v348_v43  ;;  %vm347_vm8 = vcmp.eq.f32.partialorder %v346_v46, 8.507059e+37 }
  0xac   : > { %v564_v30 = vpop.eup %563 }
  0xad   : > { %v566_v31 = vpop.eup %565  ;;  %v304_v32 = vadd.f32 1.0, %v564_v30 }
  0xae   : > { %v568_v33 = vpop.eup %567  ;;  %v308_v34 = vmul.f32 %v566_v31, %v303_v27  ;;  %vm313_vm1 = vweird.f32 %v566_v31 }
  0xaf   : > { %v570_v35 = vpop.eup %569  ;;  %571 = vrcp.f32 %v304_v32  ;;  %v338_v36 = vmul.f32 %v568_v33, %v305_v29  ;;  %vm343_vm2 = vweird.f32 %v568_v33  ;;  %vm314_vm5 = vmor %vm312_vm3, %vm313_vm1  ;;  %v333_v63 = vand.u32 2147483648, %v304_v32 }
  0xb0   : > { %v306_v38 = vadd.f32 1.0, %v570_v35  ;;  %v309_v39 = vsub.f32 1.0, %v308_v34  ;;  %vm344_vm6 = vmor %vm342_vm4, %vm343_vm2  ;;  %v331_v2 = vand.u32 2147483647, %v304_v32  ;;  %vm327_vm11 = vweird.f32 %v304_v32 }
  0xb1   : > { %v339_v40 = vsub.f32 1.0, %v338_v36  ;;  %v334_v9 = vor.u32 1.1754944e-38, %v333_v63  ;;  %vm412_vm2 = vcmask 7168  }
  0xb2   : > { %573 = vrcp.f32 %v306_v38  ;;  %v310_v44 = vmul.f32 %v566_v31, %v309_v39  ;;  %v363_v5 = vand.u32 2147483648, %v306_v38  ;;  %v361_v8 = vand.u32 2147483647, %v306_v38 }
  0xb3   : > { %v340_v45 = vmul.f32 %v568_v33, %v339_v40  ;;  %vm332_vm14 = vcmp.eq.f32.partialorder %v331_v2, 8.507059e+37  ;;  %vm357_vm15 = vweird.f32 %v306_v38 }
  0xb4   : > { %v311_v48 = vadd.f32 %v566_v31, %v310_v44  ;;  %v364_v13 = vor.u32 1.1754944e-38, %v363_v5  ;;  %vm362_vm1 = vcmp.eq.f32.partialorder %v361_v8, 8.507059e+37 }
  0xb5   : > { %v572_v49 = vpop.eup %571  ;;  %v341_v50 = vadd.f32 %v568_v33, %v340_v45 }
  0xb6   : > { %v315_v53 = vsel %vm314_vm5, %v566_v31, %v311_v48  ;;  %v323_v54 = vmul.f32 %v572_v49, %v304_v32  ;;  %vm328_vm10 = vweird.f32 %v572_v49 }
  0xb7   : > { %v345_v55 = vsel %vm344_vm6, %v568_v33, %v341_v50  ;;  %v320_v56 = vsel %vm317_vm7, %v319_v51, %v315_v53  ;;  %vm329_vm13 = vmor %vm327_vm11, %vm328_vm10 }
  0xb8   : > { %v574_v57 = vpop.eup %573  ;;  %v350_v58 = vsel %vm347_vm8, %v349_v52, %v345_v55  ;;  %v367_v59 = vmul.f32 %v320_v56, %v662_v14  ;;  %v324_v60 = vsub.f32 1.0, %v323_v54 }
  0xb9   : > { %v369_v61 = vmul.f32 %v350_v58, %v664_v15  ;;  %v353_v62 = vmul.f32 %v574_v57, %v306_v38  ;;  %vm358_vm12 = vweird.f32 %v574_v57 }
  0xba   : > { %v377_v0 = vsel %vm376_vm9, %v367_v59, 0.0  ;;  %v325_v1 = vmul.f32 %v572_v49, %v324_v60  ;;  %vm359_vm0 = vmor %vm357_vm15, %vm358_vm12 }
  0xbb   : > { %v379_v3 = vsel %vm376_vm9, %v369_v61, 0.0  ;;  %400 = vadd.xlane.f32.xlu2 %v377_v0  ;;  %v354_v4 = vsub.f32 1.0, %v353_v62 }
  0xbc   : > { %404 = vadd.xlane.f32.xlu0 %v379_v3  ;;  %v326_v6 = vadd.f32 %v572_v49, %v325_v1 }
  0xbd   : > { %v355_v7 = vmul.f32 %v574_v57, %v354_v4 }
  0xbe   : > { %v330_v10 = vsel %vm329_vm13, %v572_v49, %v326_v6 }
  0xbf   : > { %v356_v11 = vadd.f32 %v574_v57, %v355_v7  ;;  %v335_v12 = vsel %vm332_vm14, %v334_v9, %v330_v10 }
  0xc0   : > { %v368_v14 = vmul.f32 %v335_v12, %v668_v22 }
  0xc1   : > { %v360_v15 = vsel %vm359_vm0, %v574_v57, %v356_v11 }
  0xc2   : > { %v365_v16 = vsel %vm362_vm1, %v364_v13, %v360_v15  ;;  %v378_v17 = vsel %vm376_vm9, %v368_v14, 0.0 }
  0xc3   : > { %v370_v18 = vmul.f32 %v365_v16, %v670_v23  ;;  %402 = vadd.xlane.f32.xlu2 %v378_v17 }
  0xc5   : > { %v380_v19 = vsel %vm376_vm9, %v370_v18, 0.0 }
  0xc6   : > { %406 = vadd.xlane.f32.xlu1 %v380_v19 }
 0x12e   : > { %v401_v20 = vpop.xlane.xlu2 %400 }
 0x12f   : > { %v405_v21 = vpop.xlane.xlu0 %404  ;;  %v408_v22 = vmul.f32 0.015625, %v401_v20 }
 0x130   : > { %v410_v24 = vmul.f32 0.015625, %v405_v21 }
 0x131   : > { %413 = vst.msk [vmem:[%s193_s8] sm:$0xff] %vm412_vm2, %v408_v22 }
 0x132   : > { %415 = vst.msk [vmem:[%s193_s8 + $0x10] sm:$0xff] %vm412_vm2, %v410_v24 }
 0x136   : > { %v403_v25 = vpop.xlane.xlu2 %402 }
 0x137   : > { %v409_v26 = vmul.f32 0.015625, %v403_v25 }
 0x139   : > { %v407_v27 = vpop.xlane.xlu1 %406  ;;  %414 = vst.msk [vmem:[%s193_s8 + $0x8] sm:$0xff] %vm412_vm2, %v409_v26 }
 0x13a   : > { %v411_v23 = vmul.f32 0.015625, %v407_v27 }
 0x13c   : > { %416 = vst.msk [vmem:[%s193_s8 + $0x18] sm:$0xff] %vm412_vm2, %v411_v23 }
 0x13d PF: > { %s13_s14 = sadd.s32 1, %s597_s14   ;;  %s699_s12 = smov %s593_s13 }
 0x13e   : > { %p10_p5 = scmp.ge.s32.totalorder %s13_s14, 4   ;;  %s700_s13 = smov %s702_s15 }
 0x140   :  { %12 = sbr.rel (!%p10_p5) target bundleno = 2 (0x2), region = 70 }

</bundles_post_ra>
